<compile_context>
chip_gen: v6e
topology: v6e:2x2x1
jax: 0.10.0
libtpu: 0.0.40
codegen_flags: <defaults>
</compile_context>

<pallas_src>
import jax
import jax.numpy as jnp
from jax.experimental import pallas as pl
from jax.experimental.pallas import tpu as pltpu

IN_FEATURES = 48 * 4 * 4   # 768
HIDDEN = 100
HIDDEN_PAD = 128
OUT = 10
OUT_PAD = 128
NEG_BIG = -1e30


def _round_up(x, m):
    return ((x + m - 1) // m) * m


def _label_predictor_kernel(x_ref, mask_ref,
                            w1_ref, b1_ref,
                            w2_ref, b2_ref,
                            w3_ref, b3_ref,
                            out_ref):
    # ---- linear1 + ReLU (bf16 MXU operands, f32 accumulate) ----
    h1 = jnp.dot(x_ref[...], w1_ref[...], preferred_element_type=jnp.float32)
    h1 = jnp.maximum(h1 + b1_ref[...], 0.0)

    # ---- dropout(p=0.5): mask holds {0.0, 2.0}; math kept in f32 ----
    h1 = h1 * mask_ref[...].astype(jnp.float32)

    # ---- linear2 + ReLU ----
    h2 = jnp.dot(h1.astype(jnp.bfloat16), w2_ref[...],
                 preferred_element_type=jnp.float32)
    h2 = jnp.maximum(h2 + b2_ref[...], 0.0)

    # ---- linear3 (padded output columns carry bias -1e30) ----
    logits = jnp.dot(h2.astype(jnp.bfloat16), w3_ref[...],
                     preferred_element_type=jnp.float32)
    logits = logits + b3_ref[...]

    # ---- log_softmax over dim=1 (numerically stable; padded lanes vanish) ----
    m = jnp.max(logits, axis=1, keepdims=True)
    lse = jnp.log(jnp.sum(jnp.exp(logits - m), axis=1, keepdims=True)) + m
    out_ref[...] = (logits - lse).astype(out_ref.dtype)


def label_predictor(x, params, dropout_key):
    """x: (B, 768) float32. params: padded/bf16 dict from init_params."""
    B = x.shape[0]
    TB = 512 if B >= 512 else _round_up(B, 8)
    B_pad = _round_up(B, TB)
    if B_pad != B:
        x = jnp.pad(x, ((0, B_pad - B), (0, 0)))
    x_bf16 = x.astype(jnp.bfloat16)

    # Dropout mask: keep with p=0.5, kept units scaled by 1/(1-p)=2.
    keep = jax.random.bernoulli(dropout_key, 0.5, (B_pad, HIDDEN_PAD))
    mask = jnp.where(keep, 2.0, 0.0).astype(jnp.bfloat16)

    grid = (B_pad // TB,)
    rep = lambda i: (0, 0)   # weights/biases: same (full) block every step

    out = pl.pallas_call(
        _label_predictor_kernel,
        out_shape=jax.ShapeDtypeStruct((B_pad, OUT_PAD), jnp.float32),
        grid=grid,
        in_specs=[
            pl.BlockSpec((TB, IN_FEATURES), lambda i: (i, 0)),        # x tile
            pl.BlockSpec((TB, HIDDEN_PAD), lambda i: (i, 0)),         # dropout mask tile
            pl.BlockSpec((IN_FEATURES, HIDDEN_PAD), rep),             # w1
            pl.BlockSpec((1, HIDDEN_PAD), rep),                       # b1
            pl.BlockSpec((HIDDEN_PAD, HIDDEN_PAD), rep),              # w2
            pl.BlockSpec((1, HIDDEN_PAD), rep),                       # b2
            pl.BlockSpec((HIDDEN_PAD, OUT_PAD), rep),                 # w3
            pl.BlockSpec((1, OUT_PAD), rep),                          # b3
        ],
        out_specs=pl.BlockSpec((TB, OUT_PAD), lambda i: (i, 0)),
        compiler_params=pltpu.CompilerParams(
            dimension_semantics=("parallel",)),
    )(x_bf16, mask,
      params["w1"], params["b1"],
      params["w2"], params["b2"],
      params["w3"], params["b3"])

    return out[:B, :OUT]


def init_params(key):
    """nn.Linear-style U(-1/sqrt(fan_in), 1/sqrt(fan_in)) init, then pad to
    128-lane-aligned shapes (zero padding for hidden, -1e30 bias for padded
    logit columns) and cast weights to bf16."""
    def linear(key, fan_in, fan_out):
        kw, kb = jax.random.split(key)
        bound = 1.0 / jnp.sqrt(fan_in)
        w = jax.random.uniform(kw, (fan_in, fan_out), jnp.float32, -bound, bound)
        b = jax.random.uniform(kb, (fan_out,), jnp.float32, -bound, bound)
        return w, b

    k1, k2, k3 = jax.random.split(key, 3)
    w1, b1 = linear(k1, IN_FEATURES, HIDDEN)
    w2, b2 = linear(k2, HIDDEN, HIDDEN)
    w3, b3 = linear(k3, HIDDEN, OUT)

    w1p = jnp.zeros((IN_FEATURES, HIDDEN_PAD), jnp.float32).at[:, :HIDDEN].set(w1)
    b1p = jnp.zeros((1, HIDDEN_PAD), jnp.float32).at[0, :HIDDEN].set(b1)
    w2p = jnp.zeros((HIDDEN_PAD, HIDDEN_PAD), jnp.float32).at[:HIDDEN, :HIDDEN].set(w2)
    b2p = jnp.zeros((1, HIDDEN_PAD), jnp.float32).at[0, :HIDDEN].set(b2)
    w3p = jnp.zeros((HIDDEN_PAD, OUT_PAD), jnp.float32).at[:HIDDEN, :OUT].set(w3)
    b3p = jnp.full((1, OUT_PAD), NEG_BIG, jnp.float32).at[0, :OUT].set(b3)

    return {"w1": w1p.astype(jnp.bfloat16), "b1": b1p,
            "w2": w2p.astype(jnp.bfloat16), "b2": b2p,
            "w3": w3p.astype(jnp.bfloat16), "b3": b3p}


if __name__ == "__main__":
    key = jax.random.PRNGKey(0)
    kp, kx, kd = jax.random.split(key, 3)

    params = init_params(kp)
    B = 8
    x = jax.random.normal(kx, (B, IN_FEATURES), dtype=jnp.float32)

    out = label_predictor(x, params, kd)
    out = jax.block_until_ready(out)

    assert out.shape == (B, OUT)
    # log_softmax rows should (approximately) sum to 1 after exp
    row_sums = jnp.exp(out).sum(axis=1)
    assert bool(jnp.all(jnp.abs(row_sums - 1.0) < 1e-3))

    print("KERNEL_OK")
</pallas_src>

<mosaic_0001>
module attributes {stable_mosaic.version = 11 : i64} {
  func.func @_label_predictor_kernel(%arg0: i32, %arg1: memref<8x768xbf16, #tpu.memory_space<vmem>>, %arg2: memref<8x128xbf16, #tpu.memory_space<vmem>>, %arg3: memref<768x128xbf16, #tpu.memory_space<vmem>>, %arg4: memref<1x128xf32, #tpu.memory_space<vmem>>, %arg5: memref<128x128xbf16, #tpu.memory_space<vmem>>, %arg6: memref<1x128xf32, #tpu.memory_space<vmem>>, %arg7: memref<128x128xbf16, #tpu.memory_space<vmem>>, %arg8: memref<1x128xf32, #tpu.memory_space<vmem>>, %arg9: memref<8x128xf32, #tpu.memory_space<vmem>>) attributes {dimension_semantics = [#tpu.dimension_semantics<parallel>], iteration_bounds = array<i64: 1>, scalar_prefetch = 0 : i64, scratch_operands = 0 : i64, tpu.core_type = #tpu.core_type<tc>, window_params = [{transform_indices = @transform_0, window_bounds = array<i64: 8, 768>}, {transform_indices = @transform_1, window_bounds = array<i64: 8, 128>}, {pipeline_mode = #tpu.pipeline_mode<synchronous>, transform_indices = @transform_2, window_bounds = array<i64: 768, 128>}, {pipeline_mode = #tpu.pipeline_mode<synchronous>, transform_indices = @transform_3, window_bounds = array<i64: 1, 128>}, {pipeline_mode = #tpu.pipeline_mode<synchronous>, transform_indices = @transform_4, window_bounds = array<i64: 128, 128>}, {pipeline_mode = #tpu.pipeline_mode<synchronous>, transform_indices = @transform_5, window_bounds = array<i64: 1, 128>}, {pipeline_mode = #tpu.pipeline_mode<synchronous>, transform_indices = @transform_6, window_bounds = array<i64: 128, 128>}, {pipeline_mode = #tpu.pipeline_mode<synchronous>, transform_indices = @transform_7, window_bounds = array<i64: 1, 128>}, {transform_indices = @transform_8, window_bounds = array<i64: 8, 128>}]} {
    %c0 = arith.constant 0 : index
    %c0_0 = arith.constant 0 : index
    %0 = vector.load %arg1[%c0, %c0_0] : memref<8x768xbf16, #tpu.memory_space<vmem>>, vector<8x768xbf16>
    %c0_1 = arith.constant 0 : index
    %c0_2 = arith.constant 0 : index
    %1 = vector.load %arg3[%c0_1, %c0_2] : memref<768x128xbf16, #tpu.memory_space<vmem>>, vector<768x128xbf16>
    %cst = arith.constant dense<0.000000e+00> : vector<8x128xf32>
    %2 = tpu.matmul %0, %1, %cst {dimension_numbers = #tpu.dot_dimension_numbers<[1], [0], [0], [1], [0, 0, 1, 1], [], []>} : vector<8x768xbf16>, vector<768x128xbf16>, vector<8x128xf32> -> vector<8x128xf32>
    %c0_3 = arith.constant 0 : index
    %c0_4 = arith.constant 0 : index
    %3 = vector.load %arg4[%c0_3, %c0_4] : memref<1x128xf32, #tpu.memory_space<vmem>>, vector<1x128xf32>
    %4 = vector.broadcast %3 : vector<1x128xf32> to vector<8x128xf32>
    %5 = arith.addf %2, %4 : vector<8x128xf32>
    %cst_5 = arith.constant 0.000000e+00 : f32
    %6 = vector.broadcast %cst_5 : f32 to vector<8x128xf32>
    %7 = arith.maximumf %5, %6 : vector<8x128xf32>
    %c0_6 = arith.constant 0 : index
    %c0_7 = arith.constant 0 : index
    %8 = vector.load %arg2[%c0_6, %c0_7] : memref<8x128xbf16, #tpu.memory_space<vmem>>, vector<8x128xbf16>
    %9 = arith.extf %8 : vector<8x128xbf16> to vector<8x128xf32>
    %10 = arith.mulf %7, %9 : vector<8x128xf32>
    %11 = arith.truncf %10 : vector<8x128xf32> to vector<8x128xbf16>
    %c0_8 = arith.constant 0 : index
    %c0_9 = arith.constant 0 : index
    %12 = vector.load %arg5[%c0_8, %c0_9] : memref<128x128xbf16, #tpu.memory_space<vmem>>, vector<128x128xbf16>
    %cst_10 = arith.constant dense<0.000000e+00> : vector<8x128xf32>
    %13 = tpu.matmul %11, %12, %cst_10 {dimension_numbers = #tpu.dot_dimension_numbers<[1], [0], [0], [1], [0, 0, 1, 1], [], []>} : vector<8x128xbf16>, vector<128x128xbf16>, vector<8x128xf32> -> vector<8x128xf32>
    %c0_11 = arith.constant 0 : index
    %c0_12 = arith.constant 0 : index
    %14 = vector.load %arg6[%c0_11, %c0_12] : memref<1x128xf32, #tpu.memory_space<vmem>>, vector<1x128xf32>
    %15 = vector.broadcast %14 : vector<1x128xf32> to vector<8x128xf32>
    %16 = arith.addf %13, %15 : vector<8x128xf32>
    %cst_13 = arith.constant 0.000000e+00 : f32
    %17 = vector.broadcast %cst_13 : f32 to vector<8x128xf32>
    %18 = arith.maximumf %16, %17 : vector<8x128xf32>
    %19 = arith.truncf %18 : vector<8x128xf32> to vector<8x128xbf16>
    %c0_14 = arith.constant 0 : index
    %c0_15 = arith.constant 0 : index
    %20 = vector.load %arg7[%c0_14, %c0_15] : memref<128x128xbf16, #tpu.memory_space<vmem>>, vector<128x128xbf16>
    %cst_16 = arith.constant dense<0.000000e+00> : vector<8x128xf32>
    %21 = tpu.matmul %19, %20, %cst_16 {dimension_numbers = #tpu.dot_dimension_numbers<[1], [0], [0], [1], [0, 0, 1, 1], [], []>} : vector<8x128xbf16>, vector<128x128xbf16>, vector<8x128xf32> -> vector<8x128xf32>
    %c0_17 = arith.constant 0 : index
    %c0_18 = arith.constant 0 : index
    %22 = vector.load %arg8[%c0_17, %c0_18] : memref<1x128xf32, #tpu.memory_space<vmem>>, vector<1x128xf32>
    %23 = vector.broadcast %22 : vector<1x128xf32> to vector<8x128xf32>
    %24 = arith.addf %21, %23 : vector<8x128xf32>
    %cst_19 = arith.constant dense<0xFF800000> : vector<8xf32>
    %25 = vector.multi_reduction <maximumf>, %24, %cst_19 [1] : vector<8x128xf32> to vector<8xf32>
    %26 = vector.shape_cast %25 : vector<8xf32> to vector<8x1xf32>
    %27 = vector.broadcast %26 : vector<8x1xf32> to vector<8x128xf32>
    %28 = arith.subf %24, %27 : vector<8x128xf32>
    %29 = math.exp %28 : vector<8x128xf32>
    %cst_20 = arith.constant dense<0.000000e+00> : vector<8xf32>
    %30 = vector.multi_reduction <add>, %29, %cst_20 [1] : vector<8x128xf32> to vector<8xf32>
    %31 = vector.shape_cast %30 : vector<8xf32> to vector<8x1xf32>
    %32 = math.log %31 : vector<8x1xf32>
    %33 = arith.addf %32, %26 : vector<8x1xf32>
    %34 = vector.broadcast %33 : vector<8x1xf32> to vector<8x128xf32>
    %35 = arith.subf %24, %34 : vector<8x128xf32>
    %c0_21 = arith.constant 0 : index
    %c0_22 = arith.constant 0 : index
    %36 = vector.load %arg9[%c0_21, %c0_22] : memref<8x128xf32, #tpu.memory_space<vmem>>, vector<8x128xf32>
    tpu.vector_store %arg9[%c0_21, %c0_22], %35 {strides = array<i32>} : memref<8x128xf32, #tpu.memory_space<vmem>>, vector<8x128xf32>,
    return
  }
  func.func @transform_0(%arg0: i32) -> (i32, i32) {
    %c0_i32 = arith.constant 0 : i32
    %c0_i32_0 = arith.constant 0 : i32
    return %arg0, %c0_i32 : i32, i32
  }
  func.func @transform_1(%arg0: i32) -> (i32, i32) {
    %c0_i32 = arith.constant 0 : i32
    %c0_i32_0 = arith.constant 0 : i32
    return %arg0, %c0_i32 : i32, i32
  }
  func.func @transform_2(%arg0: i32) -> (i32, i32) {
    %c0_i32 = arith.constant 0 : i32
    %c0_i32_0 = arith.constant 0 : i32
    %c0_i32_1 = arith.constant 0 : i32
    return %c0_i32, %c0_i32_0 : i32, i32
  }
  func.func @transform_3(%arg0: i32) -> (i32, i32) {
    %c0_i32 = arith.constant 0 : i32
    %c0_i32_0 = arith.constant 0 : i32
    %c0_i32_1 = arith.constant 0 : i32
    return %c0_i32, %c0_i32_0 : i32, i32
  }
  func.func @transform_4(%arg0: i32) -> (i32, i32) {
    %c0_i32 = arith.constant 0 : i32
    %c0_i32_0 = arith.constant 0 : i32
    %c0_i32_1 = arith.constant 0 : i32
    return %c0_i32, %c0_i32_0 : i32, i32
  }
  func.func @transform_5(%arg0: i32) -> (i32, i32) {
    %c0_i32 = arith.constant 0 : i32
    %c0_i32_0 = arith.constant 0 : i32
    %c0_i32_1 = arith.constant 0 : i32
    return %c0_i32, %c0_i32_0 : i32, i32
  }
  func.func @transform_6(%arg0: i32) -> (i32, i32) {
    %c0_i32 = arith.constant 0 : i32
    %c0_i32_0 = arith.constant 0 : i32
    %c0_i32_1 = arith.constant 0 : i32
    return %c0_i32, %c0_i32_0 : i32, i32
  }
  func.func @transform_7(%arg0: i32) -> (i32, i32) {
    %c0_i32 = arith.constant 0 : i32
    %c0_i32_0 = arith.constant 0 : i32
    %c0_i32_1 = arith.constant 0 : i32
    return %c0_i32, %c0_i32_0 : i32, i32
  }
  func.func @transform_8(%arg0: i32) -> (i32, i32) {
    %c0_i32 = arith.constant 0 : i32
    %c0_i32_0 = arith.constant 0 : i32
    return %arg0, %c0_i32 : i32, i32
  }
}

</mosaic_0001>

<bundles_post_ra>
// kernel: tpu_custom_call.1
= control target key start
LH: loop header
LB: loop body
LE: loop exit
PB: predicated region body
PF: predicated region fallthrough
CT: control target
= control target key end

     0   :  { %13 = vsyncpa [#allocation3], 0  ;;  %s1406_s0 = inlined_call_operand.hbm [shape: bf16[8,768], index: 0, kind: input, shape index: {}]   ;;  %s1407_s1 = inlined_call_operand.hbm [shape: bf16[8,128], index: 1, kind: input, shape index: {}]   ;;  %s1408_s2 = inlined_call_operand.hbm [shape: bf16[768,128], index: 2, kind: input, shape index: {}]   ;;  %s1409_s3 = inlined_call_operand.vmem [shape: f32[1,128], index: 3, kind: input, shape index: {}]   ;;  %s1410_s4 = inlined_call_operand.hbm [shape: bf16[128,128], index: 4, kind: input, shape index: {}]   ;;  %s1411_s5 = inlined_call_operand.vmem [shape: f32[1,128], index: 5, kind: input, shape index: {}]   ;;  %s1412_s6 = inlined_call_operand.hbm [shape: bf16[128,128], index: 6, kind: input, shape index: {}]   ;;  %s1413_s7 = inlined_call_operand.vmem [shape: f32[1,128], index: 7, kind: input, shape index: {}]   ;;  %s1414_s8 = inlined_call_operand.hbm [shape: f32[8,128], index: 8, kind: output, shape index: {}]  }
   0x1   :  { %14 = vsyncpa [#allocation6], 0 }
   0x2   :  { %15 = vsyncpa [#allocation9], 0 }
   0x3   :  { %16 = vsyncpa [#allocation4], 0  ;;  %s1297_s27 = smov [#allocation5]  }
   0x4   :  { %s33_s28 = sshll.u32 %s1297_s27, 4  ;;  %s34_s28 = int_to_ptr.vmem [resolvable:$true] %s33_s28 }
   0x5   :  { %s1177_s29 = scalar_lea.vmem %s34_s28, 64  ;;  %p1182_p1 = scmp.lt.s32.totalorder %s34_s28, %s34_s28 }
   0x6   :  { %p1178_p0 = scmp.ne.s32.totalorder %s34_s28, %s1177_s29  ;;  %p1183_p2 = scmp.lt.s32.totalorder %s1177_s29, %s1177_s29 }
   0x8   :  { %p1184_p3 = por %p1183_p2, %p1182_p1 }
   0xa   :  { %p1185_p4 = pnand %p1184_p3, %p1178_p0 }
   0xc   :  { %1188 = shalt.err (!%p1185_p4)
}
   0xd   :  { %36 = dma.hbm_to_vmem [thread:$0]  %s1407_s1, 64, %s34_s28, [#allocation6]  }
   0xe   :  { %s1298_s10 = smov [#allocation8]   ;;  %s1299_s12 = smov [#allocation2]  }
   0xf   :  { %s56_s11 = sshll.u32 %s1298_s10, 4  ;;  %s23_s13 = sshll.u32 %s1299_s12, 4  ;;  %s57_s11 = int_to_ptr.vmem [resolvable:$true] %s56_s11  ;;  %s24_s13 = int_to_ptr.vmem [resolvable:$true] %s23_s13 }
  0x10   :  { %s1197_s14 = scalar_lea.vmem %s57_s11, 1024  ;;  %p1202_p6 = scmp.lt.s32.totalorder %s57_s11, %s57_s11 }
  0x11   :  { %p1198_p5 = scmp.ne.s32.totalorder %s57_s11, %s1197_s14  ;;  %p1203_p7 = scmp.lt.s32.totalorder %s1197_s14, %s1197_s14 }
  0x13   :  { %p1204_p8 = por %p1203_p7, %p1202_p6 }
  0x15   :  { %p1205_p9 = pnand %p1204_p8, %p1198_p5 }
  0x17   :  { %1208 = shalt.err (!%p1205_p9)
}
  0x18   :  { %s1300_s15 = smov 64   ;;  %s1301_s16 = smov 4  }
  0x19   :  { %62 = dma.hbm_to_vmem [thread:$0]  %s1410_s4, 1024, %s57_s11, [#allocation9], %s1300_s15, %s1300_s15, %s1301_s16  }
  0x1a   :  { %s1217_s1 = scalar_lea.vmem %s24_s13, 384  ;;  %p1222_p11 = scmp.lt.s32.totalorder %s24_s13, %s24_s13 }
  0x1b   :  { %p1218_p10 = scmp.ne.s32.totalorder %s24_s13, %s1217_s1  ;;  %p1223_p12 = scmp.lt.s32.totalorder %s1217_s1, %s1217_s1 }
  0x1d   :  { %p1224_p13 = por %p1223_p12, %p1222_p11 }
  0x1f   :  { %p1225_p0 = pnand %p1224_p13, %p1218_p10 }
  0x21   :  { %1228 = shalt.err (!%p1225_p0)
}
  0x22   :  { %26 = dma.hbm_to_vmem [thread:$0]  %s1406_s0, 384, %s24_s13, [#allocation3]  }
  0x23   :  { %s1302_s21 = smov [#allocation7]   ;;  %s1303_s23 = smov [#allocation10]  }
  0x24   :  { %s42_s22 = sshll.u32 %s1302_s21, 4  ;;  %s70_s24 = sshll.u32 %s1303_s23, 4  ;;  %s43_s22 = int_to_ptr.vmem [resolvable:$true] %s42_s22  ;;  %s71_s24 = int_to_ptr.vmem [resolvable:$true] %s70_s24 }
  0x25   :  { %s1237_s25 = scalar_lea.vmem %s43_s22, 6144  ;;  %p1242_p2 = scmp.lt.s32.totalorder %s43_s22, %s43_s22 }
  0x26   :  { %p1238_p1 = scmp.ne.s32.totalorder %s43_s22, %s1237_s25  ;;  %p1243_p3 = scmp.lt.s32.totalorder %s1237_s25, %s1237_s25 }
  0x28   :  { %p1244_p4 = por %p1243_p3, %p1242_p2 }
  0x2a   :  { %p1245_p5 = pnand %p1244_p4, %p1238_p1 }
  0x2c   :  { %1248 = shalt.err (!%p1245_p5)
}
  0x2d   :  { %48 = dma.hbm_to_vmem [thread:$0]  %s1408_s2, 6144, %s43_s22, [#allocation6], %s1300_s15, %s1300_s15, %s1301_s16  }
  0x2e   :  { %s1257_s0 = scalar_lea.vmem %s71_s24, 1024  ;;  %p1262_p7 = scmp.lt.s32.totalorder %s71_s24, %s71_s24 }
  0x2f   :  { %p1258_p6 = scmp.ne.s32.totalorder %s71_s24, %s1257_s0  ;;  %p1263_p8 = scmp.lt.s32.totalorder %s1257_s0, %s1257_s0 }
  0x31   :  { %p1264_p9 = por %p1263_p8, %p1262_p7 }
  0x33   :  { %p1265_p10 = pnand %p1264_p9, %p1258_p6 }
  0x35   :  { %1268 = shalt.err (!%p1265_p10)
}
  0x36   :  { %76 = dma.hbm_to_vmem [thread:$0]  %s1412_s6, 1024, %s71_s24, [#allocation9], %s1300_s15, %s1300_s15, %s1301_s16  }
  0x37   :  { %1289 = dma.done.wait [#allocation3], 384  }
  0x38   :  { %1290 = vsyncadd [#allocation3], 4294966912 }
  0x39   :  { %1291 = dma.done.wait [#allocation6], 6208  }
  0x3a   :  { %1292 = vsyncadd [#allocation6], 4294961088 }
  0x3b   :  { %1293 = dma.done.wait [#allocation9], 2048  }
  0x3c   :  { %1294 = vsyncadd [#allocation9], 4294965248  ;;  %v1095_v0 = vld [vmem:[#allocation7 + $0x78] sm:$0xff]   ;;  %v1099_v4 = vld [vmem:[#allocation7 + $0x70] sm:$0xff]   ;;  %v1304_v58 = vmov 0.0   ;;  %vm1305_vm0 = vmmov 0  }
  0x3d   :  { %v1096_v1 = vld [vmem:[#allocation7 + $0x38] sm:$0xff]   ;;  %961 = vmatprep.subr.bf16.mxu0 %v1095_v0  ;;  %v1100_v5 = vld [vmem:[#allocation7 + $0x30] sm:$0xff]   ;;  %v1103_v8 = vld [vmem:[#allocation7 + $0x68] sm:$0xff]  }
  0x3e   :  { %v1097_v2 = vld [vmem:[#allocation7 + $0xf8] sm:$0xff]   ;;  %962 = vmatpush3.bf16.msra.mxu0 %v1096_v1  ;;  %v1101_v6 = vld [vmem:[#allocation7 + $0xf0] sm:$0xff]   ;;  %v1104_v9 = vld [vmem:[#allocation7 + $0x28] sm:$0xff]  }
  0x3f   :  { %v1098_v3 = vld [vmem:[#allocation7 + $0xb8] sm:$0xff]   ;;  %983 = vmatprep.subr.bf16.mxu1 %v1097_v2  ;;  %963 = vmatprep.subr.bf16.mxu0 %v1099_v4  ;;  %v1102_v7 = vld [vmem:[#allocation7 + $0xb0] sm:$0xff]   ;;  %v1105_v10 = vld [vmem:[#allocation7 + $0xe8] sm:$0xff]  }
  0x40   :  { %984 = vmatpush3.bf16.msra.mxu1 %v1098_v3  ;;  %v1106_v11 = vld [vmem:[#allocation7 + $0xa8] sm:$0xff]   ;;  %v1107_v12 = vld [vmem:[#allocation7 + $0x60] sm:$0xff]   ;;  %v1111_v16 = vld [vmem:[#allocation7 + $0x58] sm:$0xff]  }
  0x41   :  { %985 = vmatprep.subr.bf16.mxu1 %v1101_v6  ;;  %v1108_v13 = vld [vmem:[#allocation7 + $0x20] sm:$0xff]   ;;  %v1112_v17 = vld [vmem:[#allocation7 + $0x18] sm:$0xff]   ;;  %v1115_v20 = vld [vmem:[#allocation7 + $0x50] sm:$0xff]  }
  0x42   :  { %964 = vmatpush3.bf16.msra.mxu0 %v1100_v5  ;;  %v1109_v14 = vld [vmem:[#allocation7 + $0xe0] sm:$0xff]   ;;  %v1113_v18 = vld [vmem:[#allocation7 + $0xd8] sm:$0xff]   ;;  %v1116_v21 = vld [vmem:[#allocation7 + $0x10] sm:$0xff]  }
  0x43   :  { %965 = vmatprep.subr.bf16.mxu0 %v1103_v8  ;;  %v1110_v15 = vld [vmem:[#allocation7 + $0xa0] sm:$0xff]   ;;  %v1114_v19 = vld [vmem:[#allocation7 + $0x98] sm:$0xff]   ;;  %v1117_v22 = vld [vmem:[#allocation7 + $0xd0] sm:$0xff]  }
  0x44   :  { %986 = vmatpush3.bf16.msra.mxu1 %v1102_v7  ;;  %v1118_v23 = vld [vmem:[#allocation7 + $0x90] sm:$0xff]   ;;  %v1119_v24 = vld [vmem:[#allocation7 + $0x48] sm:$0xff]   ;;  %v1123_v28 = vld [vmem:[#allocation7 + $0x40] sm:$0xff]  }
  0x45   :  { %987 = vmatprep.subr.bf16.mxu1 %v1105_v10  ;;  %v1120_v25 = vld [vmem:[#allocation7 + $0x8] sm:$0xff]   ;;  %v1124_v29 = vld [vmem:[#allocation7] sm:$0xff]   ;;  %v1129_v35 = vld [vmem:[#allocation7 + $0x178] sm:$0xff]  }
  0x46   :  { %966 = vmatpush3.bf16.msra.mxu0 %v1104_v9  ;;  %v1121_v26 = vld [vmem:[#allocation7 + $0xc8] sm:$0xff]   ;;  %v1125_v30 = vld [vmem:[#allocation7 + $0xc0] sm:$0xff]   ;;  %v1132_v39 = vld [vmem:[#allocation7 + $0x138] sm:$0xff]  }
  0x47   :  { %967 = vmatprep.subr.bf16.mxu0 %v1107_v12  ;;  %v1122_v27 = vld [vmem:[#allocation7 + $0x88] sm:$0xff]   ;;  %v1128_v34 = vld [vmem:[#allocation7 + $0x80] sm:$0xff]   ;;  %v1133_v40 = vld [vmem:[#allocation7 + $0x170] sm:$0xff]  }
  0x48   :  { %988 = vmatpush3.bf16.msra.mxu1 %v1106_v11  ;;  %v95_v31 = vld [vmem:[#allocation2] sm:$0xff]  ;;  %v96_v36 = vld [vmem:[#allocation2 + $0x8] sm:$0xff]  ;;  %v1139_v46 = vld [vmem:[#allocation7 + $0x158] sm:$0xff]  }
  0x49   :  { %989 = vmatprep.subr.bf16.mxu1 %v1109_v14  ;;  %v889_v32 = vcombine.low %v95_v31, %v95_v31  ;;  %v890_v33 = vcombine.high %v95_v31, %v95_v31  ;;  %v891_v37 = vcombine.low %v96_v36, %v96_v36  ;;  %v892_v38 = vcombine.high %v96_v36, %v96_v36  ;;  %v1134_v41 = vld [vmem:[#allocation7 + $0x130] sm:$0xff]   ;;  %v1135_v42 = vld [vmem:[#allocation7 + $0x168] sm:$0xff]   ;;  %v1137_v44 = vld [vmem:[#allocation7 + $0x160] sm:$0xff]  }
  0x4a   :  { %968 = vmatpush3.bf16.msra.mxu0 %v1108_v13  ;;  %v1136_v43 = vld [vmem:[#allocation7 + $0x128] sm:$0xff]   ;;  %v1138_v45 = vld [vmem:[#allocation7 + $0x120] sm:$0xff]   ;;  %v1140_v47 = vld [vmem:[#allocation7 + $0x118] sm:$0xff]  }
  0x4b   :  { %969 = vmatprep.subr.bf16.mxu0 %v1111_v16  ;;  %542 = vmatprep.mubr.bf16.mxu0 %v890_v33  ;;  %v1141_v48 = vld [vmem:[#allocation7 + $0x150] sm:$0xff]   ;;  %v1143_v52 = vld [vmem:[#allocation7 + $0x148] sm:$0xff]   ;;  %v1145_v54 = vld [vmem:[#allocation7 + $0x140] sm:$0xff]  }
  0x4c   :  { %990 = vmatpush3.bf16.msra.mxu1 %v1110_v15  ;;  %582 = vmatprep.mubr.bf16.mxu1 %v892_v38  ;;  %v97_v49 = vld [vmem:[#allocation2 + $0x10] sm:$0xff]  ;;  %v1144_v53 = vld [vmem:[#allocation7 + $0x108] sm:$0xff]   ;;  %v1146_v55 = vld [vmem:[#allocation7 + $0x100] sm:$0xff]  }
  0x4d   :  { %991 = vmatprep.subr.bf16.mxu1 %v1113_v18  ;;  %v894_v50 = vcombine.high %v97_v49, %v97_v49  ;;  %v1142_v51 = vld [vmem:[#allocation7 + $0x110] sm:$0xff]   ;;  %v893_v56 = vcombine.low %v97_v49, %v97_v49  ;;  %v1149_v57 = vld [vmem:[#allocation8 + $0x38] sm:$0xff]   ;;  %v1151_v60 = vld [vmem:[#allocation8 + $0x28] sm:$0xff]  }
  0x4e   :  { %970 = vmatpush3.bf16.msra.mxu0 %v1112_v17  ;;  %v1150_v59 = vld [vmem:[#allocation8 + $0x30] sm:$0xff]   ;;  %v1152_v61 = vld [vmem:[#allocation8 + $0x20] sm:$0xff]   ;;  %v1153_v62 = vld [vmem:[#allocation8 + $0x18] sm:$0xff]  }
  0x4f   :  { %971 = vmatprep.subr.bf16.mxu0 %v1115_v20  ;;  %v1154_v63 = vld [vmem:[#allocation8 + $0x10] sm:$0xff]   ;;  %v1155_v0 = vld [vmem:[#allocation8 + $0x8] sm:$0xff]   ;;  %v1156_v1 = vld [vmem:[#allocation8] sm:$0xff]  }
  0x50   :  { %992 = vmatpush3.bf16.msra.mxu1 %v1114_v19  ;;  %v1157_v2 = vld [vmem:[#allocation10 + $0x38] sm:$0xff]   ;;  %v1158_v3 = vld [vmem:[#allocation10 + $0x30] sm:$0xff]   ;;  %v1159_v4 = vld [vmem:[#allocation10 + $0x28] sm:$0xff]  }
  0x51   :  { %993 = vmatprep.subr.bf16.mxu1 %v1117_v22  ;;  %v1160_v5 = vld [vmem:[#allocation10 + $0x20] sm:$0xff]   ;;  %v1161_v6 = vld [vmem:[#allocation10 + $0x18] sm:$0xff]   ;;  %v1162_v7 = vld [vmem:[#allocation10 + $0x10] sm:$0xff]  }
  0x52   :  { %972 = vmatpush3.bf16.msra.mxu0 %v1116_v21  ;;  %v888_v17 = vld [vmem:[%s1409_s3] ss:$0 sm:$0xff]  ;;  %v631_v22 = vld [vmem:[#allocation5] sm:$0xf] }
  0x53   :  { %973 = vmatprep.subr.bf16.mxu0 %v1119_v24  ;;  %v1164_v33 = vld [vmem:[#allocation10] sm:$0xff]  }
  0x54   :  { %994 = vmatpush3.bf16.msra.mxu1 %v1118_v23 }
  0x55   :  { %995 = vmatprep.subr.bf16.mxu1 %v1121_v26 }
  0x56   :  { %974 = vmatpush3.bf16.msra.mxu0 %v1120_v25 }
  0x57   :  { %975 = vmatprep.subr.bf16.mxu0 %v1123_v28 }
  0x58   :  { %996 = vmatpush3.bf16.msra.mxu1 %v1122_v27  ;;  %v632_v27 = vunpack.c.l.bf16 %v631_v22 }
  0x59   :  { %997 = vmatprep.subr.bf16.mxu1 %v1125_v30 }
  0x5a   :  { %976 = vmatpush3.bf16.msra.mxu0 %v1124_v29 }
  0x5b   :  { %1005 = vmatprep.subr.bf16.mxu0 %v1129_v35 }
  0x5c   :  { %998 = vmatpush3.bf16.msra.mxu1 %v1128_v34  ;;  %v943_v34 = vld [vmem:[%s1411_s5] ss:$0 sm:$0xff]  ;;  %s1306_s5 = smov [#allocation11]  }
  0x5d   :  { %543 = vmatmul.mubr.bf16.vlgmr.msra.gmra.mxu0 %v889_v32  ;;  %1045 = vmatprep.subr.bf16.mxu1 %v1304_v58  ;;  %v1163_v32 = vld [vmem:[#allocation10 + $0x8] sm:$0xff]   ;;  %s877_s10 = sshll.u32 %s1306_s5, 4  ;;  %s878_s10 = int_to_ptr.vmem [resolvable:$true] %s877_s10 }
  0x5e   :  { %1006 = vmatpush3.bf16.msra.mxu0 %v1132_v39  ;;  %622 = vmatprep.mubr.bf16.mxu0 %v894_v50  ;;  %p1274_p12 = scmp.lt.s32.totalorder %s878_s10, %s878_s10 }
  0x5f   :  { %583 = vmatmul.mubr.bf16.vlgmr.msra.gmra.mxu1 %v891_v37  ;;  %1007 = vmatprep.subr.bf16.mxu0 %v1133_v40 }
  0x60   :  { %1046 = vmatpush3.bf16.msra.mxu1 %v1149_v57  ;;  %1061 = vmatprep.mubr.msk.bf16.mxu1 %vm1305_vm0, %v1304_v58 }
  0x61   :  { %1047 = vmatprep.subr.bf16.mxu1 %v1304_v58 }
  0x62   :  { %1008 = vmatpush3.bf16.msra.mxu0 %v1134_v41 }
  0x63   :  { %1009 = vmatprep.subr.bf16.mxu0 %v1135_v42  ;;  %v952_v42 = vld [vmem:[%s1413_s7] ss:$0 sm:$0xff]  ;;  %s1269_s7 = scalar_lea.vmem %s878_s10, 128 }
  0x64   :  { %1048 = vmatpush3.bf16.msra.mxu1 %v1150_v59  ;;  %p1270_p11 = scmp.ne.s32.totalorder %s878_s10, %s1269_s7  ;;  %p1275_p13 = scmp.lt.s32.totalorder %s1269_s7, %s1269_s7 }
  0x65   :  { %1049 = vmatprep.subr.bf16.mxu1 %v1304_v58 }
  0x66   :  { %1010 = vmatpush3.bf16.msra.mxu0 %v1136_v43  ;;  %p1276_p0 = por %p1275_p13, %p1274_p12 }
  0x67   :  { %1011 = vmatprep.subr.bf16.mxu0 %v1137_v44 }
  0x68   :  { %1050 = vmatpush3.bf16.msra.mxu1 %v1151_v60  ;;  %p1277_p1 = pnand %p1276_p0, %p1270_p11 }
  0x69   :  { %1051 = vmatprep.subr.bf16.mxu1 %v1304_v58 }
  0x6a   :  { %1012 = vmatpush3.bf16.msra.mxu0 %v1138_v45 }
  0x6b   :  { %1013 = vmatprep.subr.bf16.mxu0 %v1139_v46 }
  0x6c   :  { %1052 = vmatpush3.bf16.msra.mxu1 %v1152_v61 }
  0x6d   :  { %1053 = vmatprep.subr.bf16.mxu1 %v1304_v58 }
  0x6e   :  { %1014 = vmatpush3.bf16.msra.mxu0 %v1140_v47 }
  0x6f   :  { %1015 = vmatprep.subr.bf16.mxu0 %v1141_v48 }
  0x70   :  { %1054 = vmatpush3.bf16.msra.mxu1 %v1153_v62 }
  0x71   :  { %1055 = vmatprep.subr.bf16.mxu1 %v1304_v58 }
  0x72   :  { %1016 = vmatpush3.bf16.msra.mxu0 %v1142_v51 }
  0x73   :  { %1017 = vmatprep.subr.bf16.mxu0 %v1143_v52 }
  0x74   :  { %1056 = vmatpush3.bf16.msra.mxu1 %v1154_v63 }
  0x75   :  { %1057 = vmatprep.subr.bf16.mxu1 %v1304_v58 }
  0x76   :  { %1018 = vmatpush3.bf16.msra.mxu0 %v1144_v53 }
  0x77   :  { %1019 = vmatprep.subr.bf16.mxu0 %v1145_v54 }
  0x78   :  { %1058 = vmatpush3.bf16.msra.mxu1 %v1155_v0 }
  0x79   :  { %1059 = vmatprep.subr.bf16.mxu1 %v1304_v58 }
  0x7a   :  { %1020 = vmatpush3.bf16.msra.mxu0 %v1146_v55 }
  0x7b   :  { %1065 = vmatprep.subr.bf16.mxu0 %v1304_v58 }
  0x7c   :  { %1060 = vmatpush3.bf16.msra.mxu1 %v1156_v1 }
  0x7d   :  { %623 = vmatmul.mubr.bf16.vlgmr.msra.gmra.mxu0 %v893_v56 }
  0x7e   :  { %1081 = vmatprep.mubr.msk.bf16.mxu0 %vm1305_vm0, %v1304_v58  ;;  %1066 = vmatpush3.bf16.msra.mxu0 %v1157_v2 }
  0x7f   :  { %1067 = vmatprep.subr.bf16.mxu0 %v1304_v58 }
  0x82   :  { %1068 = vmatpush3.bf16.msra.mxu0 %v1158_v3 }
  0x83   :  { %1069 = vmatprep.subr.bf16.mxu0 %v1304_v58 }
  0x86   :  { %1070 = vmatpush3.bf16.msra.mxu0 %v1159_v4 }
  0x87   :  { %1071 = vmatprep.subr.bf16.mxu0 %v1304_v58 }
  0x8a   :  { %1072 = vmatpush3.bf16.msra.mxu0 %v1160_v5 }
  0x8b   :  { %1073 = vmatprep.subr.bf16.mxu0 %v1304_v58 }
  0x8e   :  { %1074 = vmatpush3.bf16.msra.mxu0 %v1161_v6 }
  0x8f   :  { %1075 = vmatprep.subr.bf16.mxu0 %v1304_v58 }
  0x92   :  { %1076 = vmatpush3.bf16.msra.mxu0 %v1162_v7 }
  0x93   :  { %1077 = vmatprep.subr.bf16.mxu0 %v1304_v58 }
  0x96   :  { %1078 = vmatpush3.bf16.msra.mxu0 %v1163_v32 }
  0x97   :  { %1079 = vmatprep.subr.bf16.mxu0 %v1304_v58 }
  0x9a   :  { %1080 = vmatpush3.bf16.msra.mxu0 %v1164_v33 }
 0x11d   :  { %v977_v8 = vpop.f32.mrf.mxu0 }
 0x11f   :  { %v978_v9 = vpop.f32.mrf.mxu0  ;;  %v999_v10 = vpop.f32.mrf.mxu1 }
 0x120   :  { %v979_v16 = vadd.f32 %v978_v9, %v977_v8 }
 0x121   :  { %v980_v11 = vpop.f32.mrf.mxu0  ;;  %v1000_v12 = vpop.f32.mrf.mxu1 }
 0x122   :  { %v545_v18 = vadd.f32 %v979_v16, %v888_v17  ;;  %v1001_v19 = vadd.f32 %v1000_v12, %v999_v10 }
 0x123   :  { %v981_v13 = vpop.f32.mrf.mxu0  ;;  %v1002_v14 = vpop.f32.mrf.mxu1 }
 0x124   :  { %v585_v23 = vadd.f32 %v1001_v19, %v545_v18 }
 0x125   :  { %v1003_v15 = vpop.f32.mrf.mxu1 }
 0x13d   :  { %v1021_v20 = vpop.f32.mrf.mxu0 }
 0x13f   :  { %v1022_v21 = vpop.f32.mrf.mxu0 }
 0x140   :  { %v1023_v24 = vadd.f32 %v1022_v21, %v1021_v20 }
 0x141   :  { %v1024_v25 = vpop.f32.mrf.mxu0 }
 0x142   :  { %v625_v26 = vadd.f32 %v1023_v24, %v585_v23 }
 0x143   :  { %v1025_v28 = vpop.f32.mrf.mxu0 }
 0x144   :  { %v630_v29 = vmax.f32 %v625_v26, 0.0 }
 0x146   :  { %v633_v30 = vmul.f32 %v632_v27, %v630_v29 }
 0x148   :  { %v634_v31 = vpack.c.bf16 %v633_v30, %v633_v30 }
 0x14a   :  { %1062 = vmatmul.mubr.bf16.vlgmr.msra.gmra.mxu1 %v634_v31 }
 0x20a   :  { %v740_v35 = vpop.f32.mrf.mxu1 }
 0x20b   :  { %v741_v36 = vadd.f32 %v943_v34, %v740_v35 }
 0x20c   :  { %v1063_v37 = vpop.f32.mrf.mxu1 }
 0x20d   :  { %v746_v38 = vmax.f32 %v741_v36, 0.0 }
 0x20e   :  { %v743_v39 = vpop.f32.mrf.mxu1 }
 0x20f   :  { %v747_v40 = vpack.c.bf16 %v746_v38, %v746_v38 }
 0x210   :  { %v1064_v41 = vpop.f32.mrf.mxu1 }
 0x211   :  { %1082 = vmatmul.mubr.bf16.vlgmr.msra.gmra.mxu0 %v747_v40 }
 0x2d1   :  { %v853_v43 = vpop.f32.mrf.mxu0 }
 0x2d2   :  { %v854_v44 = vadd.f32 %v952_v42, %v853_v43 }
 0x2d3   :  { %v1083_v45 = vpop.f32.mrf.mxu0 }
 0x2d4   :  { %859 = vmax.xlane.f32.xlu0 %v854_v44 }
 0x2d5   :  { %v856_v46 = vpop.f32.mrf.mxu0 }
 0x2d7   :  { %v1084_v47 = vpop.f32.mrf.mxu0 }
 0x35d   :  { %v860_v48 = vpop.xlane.xlu0 %859 }
 0x35e   :  { %v861_v49 = vsub.f32 %v854_v44, %v860_v48 }
 0x360   :  { %v862_v50 = vmul.f32 1.442695, %v861_v49 }
 0x362   :  { %1165 = vpow2.f32 %v862_v50 }
 0x36f   :  { %v1166_v51 = vpop.eup %1165 }
 0x370   :  { %864 = vadd.xlane.f32.xlu0 %v1166_v51 }
 0x3f9   :  { %v865_v52 = vpop.xlane.xlu0 %864 }
 0x3fa   :  { %1167 = vlog2.f32 %v865_v52 }
 0x407   :  { %v1168_v53 = vpop.eup %1167 }
 0x408   :  { %v867_v54 = vmul.f32 0.6931472, %v1168_v53 }
 0x40a   :  { %v868_v55 = vadd.f32 %v867_v54, %v860_v48 }
 0x40c   :  { %v869_v56 = vsub.f32 %v854_v44, %v868_v55 }
 0x40e   :  { %870 = vst [vmem:[#allocation11] sm:$0xff] %v869_v56 }
 0x40f   :  { %1280 = shalt.err (!%p1277_p1)
}
 0x410   :  { %880 = dma.vmem_to_hbm [thread:$0]  %s878_s10, 128, %s1414_s8, [#allocation4]  }
 0x411   :  { %1295 = dma.done.wait [#allocation4], 128  }
 0x412   :  { %1296 = vsyncadd [#allocation4], 4294967168 }
 0x413   :  { %884 = vsyncpa [#allocation3], 1 }
 0x414   :  { %885 = vsyncpa [#allocation6], 1 }
 0x415   :  { %886 = vsyncpa [#allocation9], 1 }
 0x416   :  { %887 = vsyncpa [#allocation4], 1 }

</bundles_post_ra>
